<compile_context>
chip_gen: v7x
topology: tpu7x:2x2x1
jax: 0.10.0
libtpu: 0.0.40
codegen_flags: <defaults>
</compile_context>

<pallas_src>
import functools

import jax
import jax.numpy as jnp
from jax import lax
from jax.experimental import pallas as pl
from jax.experimental.pallas import tpu as pltpu


# ---------------------------------------------------------------------------
# in-kernel per-tile soft-target cross-entropy
# ---------------------------------------------------------------------------
def _tile_cum(x, t, weights):
    """Soft-target CE for one tile.

    x, t: (C, L) float32 (logits / soft target probs), spatial L on the lane axis.
    returns (1, L) float32:  sum_c w[c] * t[c] * (logsumexp_c(x) - x[c])
    """
    c_classes = x.shape[0]
    if weights is None:
        weights = (1.0,) * c_classes

    if c_classes <= 16:
        # Unrolled over the tiny class axis: every op below is full-lane-width
        # VPU/EUP work on (1, L) slabs.
        xs = [x[i:i + 1, :] for i in range(c_classes)]
        ts = [t[i:i + 1, :] for i in range(c_classes)]
        m = xs[0]
        for i in range(1, c_classes):
            m = jnp.maximum(m, xs[i])
        s = jnp.exp(xs[0] - m)
        for i in range(1, c_classes):
            s = s + jnp.exp(xs[i] - m)
        lse = jnp.log(s) + m                                   # (1, L)
        cum = (weights[0] * ts[0]) * (lse - xs[0])
        for i in range(1, c_classes):
            cum = cum + (weights[i] * ts[i]) * (lse - xs[i])
        return cum

    # Many-class fallback: vectorized with (cheap) sublane reductions over C.
    w_col = jnp.asarray(weights, jnp.float32).reshape(c_classes, 1)
    m = jnp.max(x, axis=0, keepdims=True)
    lse = jnp.log(jnp.sum(jnp.exp(x - m), axis=0, keepdims=True)) + m
    wt = t * w_col
    return lse * jnp.sum(wt, axis=0, keepdims=True) - jnp.sum(wt * x, axis=0, keepdims=True)


def _lane_mask(t_hw, hw_total):
    """Valid-lane mask for the (possibly ragged) spatial tile at grid axis 1."""
    j = pl.program_id(1)
    lane = lax.broadcasted_iota(jnp.int32, (1, t_hw), 1)
    return (j * t_hw + lane) < hw_total


# ---------------------------------------------------------------------------
# kernels
# ---------------------------------------------------------------------------
def _h2s_sum_kernel(x_ref, t_ref, acc_ref, *, weights, hw_total, ragged):
    """Per-batch-group partial sum of the soft-CE map.

    acc_ref is the (1, t_hw) output block; its index_map is constant along the
    spatial-tile axis, so it stays resident in VMEM and acts as a lane-wide
    vector accumulator (pure elementwise VPU add per step).
    """
    j = pl.program_id(1)

    @pl.when(j == 0)
    def _():
        acc_ref[...] = jnp.zeros_like(acc_ref)

    x = x_ref[...].astype(jnp.float32)          # (C, t_hw)
    t = t_ref[...].astype(jnp.float32)          # (C, t_hw)
    if ragged:
        mask = _lane_mask(x.shape[-1], hw_total)
        x = jnp.where(mask, x, 0.0)
        t = jnp.where(mask, t, 0.0)
    acc_ref[...] += _tile_cum(x, t, weights)


def _h2s_map_kernel(x_ref, t_ref, out_ref, *, weights):
    """reduction='none': write the per-element soft-CE map, lane-dense."""
    x = x_ref[...].astype(jnp.float32)
    t = t_ref[...].astype(jnp.float32)
    out_ref[...] = _tile_cum(x, t, weights)     # ragged-tail OOB lanes are dropped on writeback


# ---------------------------------------------------------------------------
# wrapper
# ---------------------------------------------------------------------------
_MAX_SPATIAL_TILE = 8192  # lanes; 2 inputs x double-buffer x C x 8192 x 4B << 32 MiB scoped VMEM


def hard2soft_cross_entropy_pallas(output, target, *, weights=None, reduction='mean'):
    """Fused Hard2SoftLoss(cross_entropy) forward.

    output: (N, C, *spatial) logits; target: (N, C, *spatial) soft class probabilities.
    """
    if output.ndim < 2:
        raise ValueError("output must be (N, C, *spatial)")
    n, c = int(output.shape[0]), int(output.shape[1])
    spatial = tuple(int(s) for s in output.shape[2:])
    hw = 1
    for s in spatial:
        hw *= s
    hw = max(hw, 1)

    if weights is not None:
        weights = tuple(float(w) for w in weights)
        assert len(weights) == c, "weights must have one entry per class"

    # Free reshapes: contiguous NC* is already laid out as (N, C, H*W). No transpose.
    x3 = output.reshape(n, c, hw)
    t3 = target.reshape(n, c, hw)

    if hw <= _MAX_SPATIAL_TILE:
        t_hw, grid_hw, ragged = hw, 1, False
    else:
        t_hw = _MAX_SPATIAL_TILE                      # multiple of 128
        grid_hw = pl.cdiv(hw, t_hw)
        ragged = (hw % t_hw) != 0

    grid = (n, grid_hw)
    in_specs = [
        pl.BlockSpec((None, c, t_hw), lambda g, j: (g, 0, j)),   # logits, lane-dense spatial
        pl.BlockSpec((None, c, t_hw), lambda g, j: (g, 0, j)),   # soft targets, same layout
    ]

    if reduction == 'none':
        out = pl.pallas_call(
            functools.partial(_h2s_map_kernel, weights=weights),
            out_shape=jax.ShapeDtypeStruct((n, 1, hw), jnp.float32),
            grid_spec=pltpu.PrefetchScalarGridSpec(
                num_scalar_prefetch=0,
                grid=grid,
                in_specs=in_specs,
                out_specs=pl.BlockSpec((None, 1, t_hw), lambda g, j: (g, 0, j)),
            ),
            compiler_params=pltpu.CompilerParams(
                dimension_semantics=("parallel", "parallel"),
            ),
        )(x3, t3)
        return out.reshape((n,) + spatial)

    if reduction not in ('mean', 'sum'):
        raise ValueError("Keyword 'reduction' must be one of ['mean', 'sum', 'none']")

    partials = pl.pallas_call(
        functools.partial(_h2s_sum_kernel, weights=weights, hw_total=hw, ragged=ragged),
        out_shape=jax.ShapeDtypeStruct((n, 1, t_hw), jnp.float32),
        grid_spec=pltpu.PrefetchScalarGridSpec(
            num_scalar_prefetch=0,
            grid=grid,
            in_specs=in_specs,
            out_specs=pl.BlockSpec((None, 1, t_hw), lambda g, j: (g, 0, 0)),
        ),
        compiler_params=pltpu.CompilerParams(
            # batch groups independent -> megacore-splittable on v7x;
            # spatial-tile axis carries the resident accumulator -> arbitrary.
            dimension_semantics=("parallel", "arbitrary"),
        ),
    )(x3, t3)

    total = jnp.sum(partials)      # single cross-lane reduce, once per call (not per tile)
    if reduction == 'mean':
        return total / jnp.float32(n * hw)
    return total


# ---------------------------------------------------------------------------
# module mirror
# ---------------------------------------------------------------------------
def softmax_cross_entropy_none(output, target, reduction='none'):
    """Pure-JAX analogue of F.cross_entropy(..., reduction='none') with hard labels."""
    assert reduction == 'none'
    logp = jax.nn.log_softmax(output.astype(jnp.float32), axis=1)
    t = target.astype(jnp.int32)
    picked = jnp.take_along_axis(logp, t[:, None, ...], axis=1)
    return -picked[:, 0, ...]


class Hard2SoftLoss:
    """JAX/Pallas mirror of niclib Hard2SoftLoss.

    For the canonical cross-entropy instantiation the whole forward
    (per-class loop + softmax + weighting + reduction) is fused into one Pallas TPU
    kernel; other loss callables fall back to the literal per-class loop in plain JAX.
    """

    def __init__(self, loss_function=None, weights=None, reduction='mean'):
        if reduction not in ('mean', 'sum', 'none'):
            raise ValueError("Keyword 'reduction' must be one of ['mean', 'sum', 'none']")
        self.loss_fn = loss_function
        self.weights = None if weights is None else tuple(float(w) for w in weights)
        self.reduction = reduction

    def __call__(self, output, target):
        if self.loss_fn is None or self.loss_fn is softmax_cross_entropy_none:
            return hard2soft_cross_entropy_pallas(
                output, target, weights=self.weights, reduction=self.reduction)

        # TODO(synk): arbitrary user `loss_function` callables cannot be fused into the
        # Pallas kernel; this branch is the literal (non-Pallas) per-class loop from the spec.
        n, c = output.shape[0], output.shape[1]
        cum = jnp.zeros((n,) + tuple(output.shape[2:]), jnp.float32)
        for y in range(c):
            tgt = jnp.full((n,) + tuple(output.shape[2:]), y, dtype=jnp.int32)
            y_loss = self.loss_fn(output, tgt, reduction='none')
            if self.weights is not None:
                y_loss = y_loss * self.weights[y]
            cum = cum + target[:, y].astype(jnp.float32) * y_loss
        if self.reduction == 'none':
            return cum
        if self.reduction == 'mean':
            return jnp.mean(cum)
        return jnp.sum(cum)


# ---------------------------------------------------------------------------
# pure-JAX reference (mirrors the torch forward exactly) + demo
# ---------------------------------------------------------------------------
def _reference_h2s(output, target, weights, reduction):
    n, c = output.shape[0], output.shape[1]
    logp = jax.nn.log_softmax(output.astype(jnp.float32), axis=1)
    cum = jnp.zeros((n,) + tuple(output.shape[2:]), jnp.float32)
    for y in range(c):
        y_loss = -logp[:, y]
        if weights is not None:
            y_loss = y_loss * weights[y]
        cum = cum + target[:, y].astype(jnp.float32) * y_loss
    if reduction == 'none':
        return cum
    if reduction == 'mean':
        return jnp.mean(cum)
    return jnp.sum(cum)


if __name__ == "__main__":
    key = jax.random.PRNGKey(0)
    k1, k2 = jax.random.split(key)

    N, C, H, W = 2, 4, 16, 16
    output = jax.random.normal(k1, (N, C, H, W), dtype=jnp.float32)              # logits, NCHW
    target = jax.nn.softmax(jax.random.normal(k2, (N, C, H, W), jnp.float32), 1)  # soft targets

    # default instantiation: Hard2SoftLoss(F.cross_entropy) with mean reduction
    loss_mod = Hard2SoftLoss(softmax_cross_entropy_none, weights=None, reduction='mean')
    loss = jax.block_until_ready(loss_mod(output, target))
    ref = _reference_h2s(output, target, None, 'mean')
    assert jnp.allclose(loss, ref, rtol=1e-5, atol=1e-5), (loss, ref)

    # reduction='none' map path
    loss_map = jax.block_until_ready(Hard2SoftLoss(reduction='none')(output, target))
    ref_map = _reference_h2s(output, target, None, 'none')
    assert loss_map.shape == (N, H, W)
    assert jnp.allclose(loss_map, ref_map, rtol=1e-5, atol=1e-5)

    # weighted + sum reduction
    w = (1.0, 2.0, 0.5, 1.5)
    loss_w = jax.block_until_ready(Hard2SoftLoss(weights=w, reduction='sum')(output, target))
    ref_w = _reference_h2s(output, target, w, 'sum')
    assert jnp.allclose(loss_w, ref_w, rtol=1e-4, atol=1e-4), (loss_w, ref_w)

    print("KERNEL_OK")
</pallas_src>

<mosaic_0001>
module attributes {stable_mosaic.version = 11 : i64} {
  func.func @_h2s_sum_kernel(%arg0: i32, %arg1: i32, %arg2: memref<1x4x256xf32, #tpu.memory_space<vmem>>, %arg3: memref<1x4x256xf32, #tpu.memory_space<vmem>>, %arg4: memref<1x1x256xf32, #tpu.memory_space<vmem>>) attributes {dimension_semantics = [#tpu.dimension_semantics<parallel>, #tpu.dimension_semantics<arbitrary>], iteration_bounds = array<i64: 2, 1>, scalar_prefetch = 0 : i64, scratch_operands = 0 : i64, tpu.core_type = #tpu.core_type<tc>, window_params = [{transform_indices = @transform_0, window_bounds = array<i64: 1, 4, 256>}, {transform_indices = @transform_1, window_bounds = array<i64: 1, 4, 256>}, {transform_indices = @transform_2, window_bounds = array<i64: 1, 1, 256>}]} {
    %c0_i32 = arith.constant 0 : i32
    %0 = arith.cmpi eq, %arg1, %c0_i32 : i32
    %1 = arith.extui %0 : i1 to i32
    %c0_i32_0 = arith.constant 0 : i32
    %2 = arith.cmpi ne, %1, %c0_i32_0 : i32
    scf.if %2 {
      %cst_15 = arith.constant 0.000000e+00 : f32
      %56 = vector.broadcast %cst_15 : f32 to vector<1x256xf32>
      %c0_16 = arith.constant 0 : index
      %c0_17 = arith.constant 0 : index
      %c0_18 = arith.constant 0 : index
      %57 = vector.load %arg4[%c0_16, %c0_17, %c0_18] : memref<1x1x256xf32, #tpu.memory_space<vmem>>, vector<1x1x256xf32>
      %58 = vector.shape_cast %57 : vector<1x1x256xf32> to vector<1x256xf32>
      %59 = vector.shape_cast %56 : vector<1x256xf32> to vector<1x1x256xf32>
      tpu.vector_store %arg4[%c0_16, %c0_17, %c0_18], %59 {strides = array<i32>} : memref<1x1x256xf32, #tpu.memory_space<vmem>>, vector<1x1x256xf32>,
    } else {
    }
    %c0 = arith.constant 0 : index
    %c0_1 = arith.constant 0 : index
    %c0_2 = arith.constant 0 : index
    %3 = vector.load %arg2[%c0, %c0_1, %c0_2] : memref<1x4x256xf32, #tpu.memory_space<vmem>>, vector<1x4x256xf32>
    %4 = vector.shape_cast %3 : vector<1x4x256xf32> to vector<4x256xf32>
    %c0_3 = arith.constant 0 : index
    %c0_4 = arith.constant 0 : index
    %c0_5 = arith.constant 0 : index
    %5 = vector.load %arg3[%c0_3, %c0_4, %c0_5] : memref<1x4x256xf32, #tpu.memory_space<vmem>>, vector<1x4x256xf32>
    %6 = vector.shape_cast %5 : vector<1x4x256xf32> to vector<4x256xf32>
    %c0_6 = arith.constant 0 : index
    %c0_7 = arith.constant 0 : index
    %c0_8 = arith.constant 0 : index
    %7 = vector.load %arg4[%c0_6, %c0_7, %c0_8] : memref<1x1x256xf32, #tpu.memory_space<vmem>>, vector<1x1x256xf32>
    %8 = vector.shape_cast %7 : vector<1x1x256xf32> to vector<1x256xf32>
    %9 = vector.extract_strided_slice %4 {offsets = [0, 0], sizes = [1, 256], strides = [1, 1]} : vector<4x256xf32> to vector<1x256xf32>
    %10 = vector.extract_strided_slice %4 {offsets = [1, 0], sizes = [1, 256], strides = [1, 1]} : vector<4x256xf32> to vector<1x256xf32>
    %11 = vector.extract_strided_slice %4 {offsets = [2, 0], sizes = [1, 256], strides = [1, 1]} : vector<4x256xf32> to vector<1x256xf32>
    %12 = vector.extract_strided_slice %4 {offsets = [3, 0], sizes = [1, 256], strides = [1, 1]} : vector<4x256xf32> to vector<1x256xf32>
    %13 = vector.extract_strided_slice %6 {offsets = [0, 0], sizes = [1, 256], strides = [1, 1]} : vector<4x256xf32> to vector<1x256xf32>
    %14 = vector.extract_strided_slice %6 {offsets = [1, 0], sizes = [1, 256], strides = [1, 1]} : vector<4x256xf32> to vector<1x256xf32>
    %15 = vector.extract_strided_slice %6 {offsets = [2, 0], sizes = [1, 256], strides = [1, 1]} : vector<4x256xf32> to vector<1x256xf32>
    %16 = vector.extract_strided_slice %6 {offsets = [3, 0], sizes = [1, 256], strides = [1, 1]} : vector<4x256xf32> to vector<1x256xf32>
    %17 = arith.maximumf %9, %10 : vector<1x256xf32>
    %18 = arith.maximumf %17, %11 : vector<1x256xf32>
    %19 = arith.maximumf %18, %12 : vector<1x256xf32>
    %20 = arith.subf %9, %19 : vector<1x256xf32>
    %21 = math.exp %20 : vector<1x256xf32>
    %22 = arith.subf %10, %19 : vector<1x256xf32>
    %23 = math.exp %22 : vector<1x256xf32>
    %24 = arith.addf %21, %23 : vector<1x256xf32>
    %25 = arith.subf %11, %19 : vector<1x256xf32>
    %26 = math.exp %25 : vector<1x256xf32>
    %27 = arith.addf %24, %26 : vector<1x256xf32>
    %28 = arith.subf %12, %19 : vector<1x256xf32>
    %29 = math.exp %28 : vector<1x256xf32>
    %30 = arith.addf %27, %29 : vector<1x256xf32>
    %31 = math.log %30 : vector<1x256xf32>
    %32 = arith.addf %31, %19 : vector<1x256xf32>
    %cst = arith.constant 1.000000e+00 : f32
    %33 = vector.broadcast %cst : f32 to vector<1x256xf32>
    %34 = arith.mulf %33, %13 : vector<1x256xf32>
    %35 = arith.subf %32, %9 : vector<1x256xf32>
    %36 = arith.mulf %34, %35 : vector<1x256xf32>
    %cst_9 = arith.constant 1.000000e+00 : f32
    %37 = vector.broadcast %cst_9 : f32 to vector<1x256xf32>
    %38 = arith.mulf %37, %14 : vector<1x256xf32>
    %39 = arith.subf %32, %10 : vector<1x256xf32>
    %40 = arith.mulf %38, %39 : vector<1x256xf32>
    %41 = arith.addf %36, %40 : vector<1x256xf32>
    %cst_10 = arith.constant 1.000000e+00 : f32
    %42 = vector.broadcast %cst_10 : f32 to vector<1x256xf32>
    %43 = arith.mulf %42, %15 : vector<1x256xf32>
    %44 = arith.subf %32, %11 : vector<1x256xf32>
    %45 = arith.mulf %43, %44 : vector<1x256xf32>
    %46 = arith.addf %41, %45 : vector<1x256xf32>
    %cst_11 = arith.constant 1.000000e+00 : f32
    %47 = vector.broadcast %cst_11 : f32 to vector<1x256xf32>
    %48 = arith.mulf %47, %16 : vector<1x256xf32>
    %49 = arith.subf %32, %12 : vector<1x256xf32>
    %50 = arith.mulf %48, %49 : vector<1x256xf32>
    %51 = arith.addf %46, %50 : vector<1x256xf32>
    %52 = arith.addf %8, %51 : vector<1x256xf32>
    %c0_12 = arith.constant 0 : index
    %c0_13 = arith.constant 0 : index
    %c0_14 = arith.constant 0 : index
    %53 = vector.load %arg4[%c0_12, %c0_13, %c0_14] : memref<1x1x256xf32, #tpu.memory_space<vmem>>, vector<1x1x256xf32>
    %54 = vector.shape_cast %53 : vector<1x1x256xf32> to vector<1x256xf32>
    %55 = vector.shape_cast %52 : vector<1x256xf32> to vector<1x1x256xf32>
    tpu.vector_store %arg4[%c0_12, %c0_13, %c0_14], %55 {strides = array<i32>} : memref<1x1x256xf32, #tpu.memory_space<vmem>>, vector<1x1x256xf32>,
    return
  }
  func.func @transform_0(%arg0: i32, %arg1: i32) -> (i32, i32, i32) {
    %c0_i32 = arith.constant 0 : i32
    %c0_i32_0 = arith.constant 0 : i32
    return %arg0, %c0_i32, %arg1 : i32, i32, i32
  }
  func.func @transform_1(%arg0: i32, %arg1: i32) -> (i32, i32, i32) {
    %c0_i32 = arith.constant 0 : i32
    %c0_i32_0 = arith.constant 0 : i32
    return %arg0, %c0_i32, %arg1 : i32, i32, i32
  }
  func.func @transform_2(%arg0: i32, %arg1: i32) -> (i32, i32, i32) {
    %c0_i32 = arith.constant 0 : i32
    %c0_i32_0 = arith.constant 0 : i32
    %c0_i32_1 = arith.constant 0 : i32
    return %arg0, %c0_i32, %c0_i32_0 : i32, i32, i32
  }
}

</mosaic_0001>

<bundles_post_ra>
// kernel: tpu_custom_call.1
= control target key start
LH: loop header
LB: loop body
LE: loop exit
PB: predicated region body
PF: predicated region fallthrough
CT: control target
= control target key end

     0   :  { %7 = vsyncpa [#allocation3], 0  ;;  %s971_s0 = inlined_call_operand.hbm [shape: f32[2,4,256], index: 0, kind: input, shape index: {}]   ;;  %s972_s1 = inlined_call_operand.hbm [shape: f32[2,4,256], index: 1, kind: input, shape index: {}]   ;;  %s973_s2 = inlined_call_operand.hbm [shape: f32[2,1,256], index: 2, kind: output, shape index: {}]  }
   0x1   :  { %9 = vsyncpa [#allocation3 + $0x1], 0 }
   0x2   :  { %10 = vsyncpa [#allocation6], 0 }
   0x3   :  { %12 = vsyncpa [#allocation6 + $0x1], 0 }
   0x4   :  { %13 = vsyncpa [#allocation4], 0 }
   0x5   :  { %15 = vsyncpa [#allocation4 + $0x1], 0  ;;  %s733_s9 = smov 0   ;;  %s735_s10 = smov 0  }
   0x6   :  { %s737_s11 = smov 0   ;;  %s739_s12 = smov 0  }
   0x7   :  { %s741_s13 = smov 0   ;;  %s743_s14 = smov 0  }
   0x8 LB: > { %s458_s15 = sadd.s32 4294967295, %s711_s14   ;;  %s459_s16 = sadd.s32 4294967294, %s711_s14   ;;  %s711_s14 = sphi %s743_s14, %s21_s14   ;;  %s707_s13 = sphi %s741_s13, %s995_s13   ;;  %s703_s12 = sphi %s739_s12, %s994_s12   ;;  %s699_s11 = sphi %s737_s11, %s993_s11   ;;  %s695_s10 = sphi %s735_s10, %s992_s10   ;;  %s691_s9 = sphi %s733_s9, %s991_s9  }
   0x9   : > { %s33_s17 = sadd.s32 1, %s707_s13  ;;  %s42_s18 = sadd.s32 1, %s699_s11 }
   0xa   : > { %p35_p0 = scmp.ge.s32.totalorder %s33_s17, 2  ;;  %p49_p1 = scmp.ne.s32.totalorder %s699_s11, %s695_s10 }
   0xb   : > { %p50_p2 = scmp.eq.s32.totalorder %s711_s14, 0  ;;  %p55_p3 = scmp.ne.s32.totalorder %s695_s10, %s691_s9 }
   0xc   : > { %s997_s17 = smov (%p35_p0, %s33_s17), 0  ;;  %p56_p5 = scmp.eq.s32.totalorder %s458_s15, 0 }
   0xd   : > { %p774_p4 = por %p50_p2, %p49_p1  ;;  %s37_s20 = ssub.s32 %s707_s13, %s997_s17 }
   0xe   : > { %p107_p6 = scmp.eq.s32.totalorder %s458_s15, 1  ;;  %p40_p7 = scmp.eq.s32.totalorder %s37_s20, 0 }
   0xf   : > { %p780_p8 = por %p56_p5, %p55_p3  ;;  %p113_p10 = scmp.eq.s32.totalorder %s459_s16, 1 }
  0x10   : > { %p784_p9 = por %p107_p6, %p49_p1  ;;  %p503_p13 = scmp.lt.s32.totalorder %s711_s14, 2 }
  0x11   : > { %s977_s21 = scalar_select %p780_p8, 1, 0 }
  0x12   : > { %s978_s22 = scalar_select %p784_p9, 1, 0 }
  0x13   : > { %s789_s23 = scalar_select %p40_p7, %s699_s11, %s42_s18  }
  0x14   : > { %p791_p11 = por %p113_p10, %p55_p3  ;;  %s798_s25 = sand.u32 1, %s699_s11  }
  0x15   : > { %s462_s26 = sshll.u32 %s798_s25, 3  ;;  %s483_s27 = sshll.u32 %s707_s13, 7 }
  0x16   : > { %s979_s24 = scalar_select %p791_p11, 1, 0 }
  0x17   : > { %s807_s30 = scalar_lea.hbm %s971_s0, %s483_s27  ;;  %s137_s3 = scalar_lea.vmem [#allocation2], %s462_s26 }
  0x18   : > { %s147_s4 = sshll.u32 %s137_s3, 4  ;;  %p815_p0 = pnand %p503_p13, %p774_p4  ;;  %s811_s4 = int_to_ptr.vmem [resolvable:$true] %s147_s4 }
  0x19   : > { %s134_s6 = scalar_lea.sflag [#allocation3], %s798_s25  ;;  %s565_s7 = scalar_lea.hbm %s807_s30, 128 }
  0x1a   : > { %p566_p3 = scmp.ne.s32.totalorder %s807_s30, %s565_s7  ;;  %p567_p5 = pneg %p815_p0 }
  0x1b   : > { %s570_s16 = scalar_lea.hbm %s971_s0, 256  ;;  %p571_p4 = scmp.lt.u32.totalorder %s807_s30, %s971_s0 }
  0x1c   : > { %p568_p6 = pnand %p567_p5, %p566_p3  ;;  %p572_p10 = scmp.lt.u32.totalorder %s570_s16, %s565_s7 }
  0x1d   : > { %p574_p12 = scmp.lt.u32.totalorder %s565_s7, %s807_s30 }
  0x1e   : > { %p569_p7 = pneg %p568_p6  ;;  %p573_p13 = por %p572_p10, %p571_p4 }
  0x20   : > { %p575_p1 = por %p574_p12, %p573_p13 }
  0x22   : > { %p576_p2 = pnand %p575_p1, %p569_p7 }
  0x24   : > { %579 = shalt.err (!%p576_p2)
}
  0x25   : > { %s580_s20 = scalar_lea.vmem %s811_s4, 128  ;;  %s713_s28 = smov [#allocation2]  }
  0x26   : > { %p581_p3 = scmp.ne.s32.totalorder %s811_s4, %s580_s20  ;;  %s585_s29 = sshll.u32 %s713_s28, 4  ;;  %s586_s29 = int_to_ptr.vmem [resolvable:$false] %s585_s29 }
  0x27   : > { %s587_s3 = scalar_lea.vmem %s586_s29, 256  ;;  %p588_p9 = scmp.lt.s32.totalorder %s811_s4, %s586_s29 }
  0x28   : > { %p583_p6 = pnand %p581_p3, %p567_p5  ;;  %p589_p4 = scmp.lt.s32.totalorder %s587_s3, %s580_s20 }
  0x2a   : > { %p584_p11 = pneg %p583_p6  ;;  %p590_p10 = por %p589_p4, %p588_p9 }
  0x2c   : > { %p591_p12 = pnand %p590_p10, %p584_p11 }
  0x2e   : > { %594 = shalt.err (!%p591_p12)
}
  0x2f   : > { %495 = dma.hbm_to_vmem [thread:$0]  (!%p815_p0), %s807_s30, 128, %s811_s4, %s134_s6  }
  0x30   : > { %p981_p1 = scmp.lt.s32.totalorder %s711_s14, 3  ;;  %p982_p2 = scmp.ge.s32.totalorder %s711_s14, 1 }
  0x31   : > { %s860_s16 = scalar_lea.hbm %s972_s1, %s483_s27  ;;  %s158_s18 = scalar_lea.vmem [#allocation5], %s462_s26 }
  0x32   : > { %p851_p7 = pnand %p982_p2, %p981_p1  ;;  %s168_s19 = sshll.u32 %s158_s18, 4  ;;  %s169_s19 = int_to_ptr.vmem [resolvable:$true] %s168_s19 }
  0x33   : > { %s155_s30 = scalar_lea.sflag [#allocation6], %s798_s25  ;;  %s595_s4 = scalar_lea.hbm %s860_s16, 128 }
  0x34   : > { %s983_s7 = scalar_select %p851_p7, 1, 0 }
  0x35   : > { %p596_p9 = scmp.ne.s32.totalorder %s860_s16, %s595_s4  ;;  %s600_s27 = scalar_lea.hbm %s972_s1, 256 }
  0x36   : > { %p601_p3 = scmp.lt.u32.totalorder %s860_s16, %s972_s1  ;;  %p602_p6 = scmp.lt.u32.totalorder %s600_s27, %s595_s4 }
  0x37   : > { %p598_p11 = pnand %p596_p9, %p567_p5  ;;  %p604_p10 = scmp.lt.u32.totalorder %s595_s4, %s860_s16 }
  0x38   : > { %p603_p4 = por %p602_p6, %p601_p3 }
  0x39   : > { %p599_p13 = pneg %p598_p11 }
  0x3a   : > { %p605_p12 = por %p604_p10, %p603_p4 }
  0x3c   : > { %p606_p1 = pnand %p605_p12, %p599_p13 }
  0x3e   : > { %609 = shalt.err (!%p606_p1)
}
  0x3f   : > { %s610_s25 = scalar_lea.vmem %s169_s19, 128  ;;  %s714_s26 = smov [#allocation5]  }
  0x40   : > { %p611_p2 = scmp.ne.s32.totalorder %s169_s19, %s610_s25  ;;  %s615_s3 = sshll.u32 %s714_s26, 4  ;;  %s616_s3 = int_to_ptr.vmem [resolvable:$false] %s615_s3 }
  0x41   : > { %s617_s8 = scalar_lea.vmem %s616_s3, 256  ;;  %p618_p8 = scmp.lt.s32.totalorder %s169_s19, %s616_s3 }
  0x42   : > { %p613_p9 = pnand %p611_p2, %p567_p5  ;;  %p619_p7 = scmp.lt.s32.totalorder %s617_s8, %s610_s25 }
  0x44   : > { %p614_p11 = pneg %p613_p9  ;;  %p620_p3 = por %p619_p7, %p618_p8 }
  0x46   : > { %p621_p6 = pnand %p620_p3, %p614_p11 }
  0x48   : > { %624 = shalt.err (!%p621_p6)
}
  0x49   : > { %498 = dma.hbm_to_vmem [thread:$0]  (!%p815_p0), %s860_s16, 128, %s169_s19, %s155_s30  }
  0x4a   : > { %p984_p13 = scmp.ne.s32.totalorder %s983_s7, 0 }
  0x4b   : > { %s887_s15 = sand.u32 (!%p984_p13), 1, %s695_s10   ;;  %p985_p5 = scmp.ne.s32.totalorder (!%p984_p13), %s977_s21, 0 }
  0x4c   : > { %177 = sbr.rel (%p984_p13) target bundleno = 171 (0xab), region = 28  ;;  %s469_s18 = sshll.u32 (!%p984_p13), %s887_s15, 3 }
  0x4d   : > { %s180_s4 = scalar_lea.sflag (!%p984_p13), [#allocation3], %s887_s15  ;;  %s183_s6 = scalar_lea.vmem (!%p984_p13), [#allocation2], %s469_s18 }
  0x53   : > { %678 = dma.done.wait (%p985_p5), %s180_s4, 128  }
  0x54   : > { %680 = vsyncadd (%p985_p5), %s180_s4, 4294967168  ;;  %s189_s5 = scalar_lea.sflag [#allocation6], %s887_s15  ;;  %s896_s16 = scalar_lea.vmem [#allocation5], %s469_s18 }
  0x55   : > { %682 = dma.done.wait (%p985_p5), %s189_s5, 128  }
  0x56   : > { %684 = vsyncadd (%p985_p5), %s189_s5, 4294967168  ;;  %s471_s7 = sshll.u32 %s887_s15, 1  ;;  %v224_v0 = vlaneseq  ;;  %v715_v2 = vmov 0.0   ;;  %v229_v3 = vld [vmem:[%s183_s6] sm:$0xff]  ;;  %v230_v41 = vld [vmem:[%s896_s16] sm:$0xff]  ;;  %s485_s21 = sshll.u32 %s703_s12, 5 }
  0x57   : > { %s907_s19 = scalar_lea.vmem [#allocation7], %s471_s7  ;;  %v233_v4 = vrot.slane %v229_v3, 5  ;;  %v237_v5 = vrot.slane %v229_v3, 6  ;;  %v241_v6 = vrot.slane %v229_v3, 7  ;;  %v716_v45 = vmov 1966171168   ;;  %s919_s28 = scalar_lea.hbm %s973_s2, %s485_s21 }
  0x58   : > { %vm903_vm0 = vcmp.lt.s32.totalorder %v224_v0, 256  ;;  %v316_v46 = vunpack.c.l.s4 %v716_v45  ;;  %v319_v54 = vshrl.u32 %v224_v0, 7  ;;  %s351_s30 = sshll.u32 %s907_s19, 4  ;;  %s337_s29 = scalar_lea.sflag [#allocation4], %s887_s15  ;;  %s921_s30 = int_to_ptr.vmem [resolvable:$true] %s351_s30 }
  0x59   : > { %228 = vst.msk [vmem:[%s907_s19] sm:$0x3] %vm903_vm0, %v715_v2  ;;  %v234_v7 = vrot.slane %v233_v4, 4  ;;  %v238_v8 = vrot.slane %v237_v5, 4  ;;  %v242_v10 = vrot.slane %v241_v6, 4  ;;  %s625_s25 = scalar_lea.vmem %s921_s30, 32 }
  0x5a   : > { %v317_v53 = vunpack.c.0.s8 %v316_v46  ;;  %p626_p8 = scmp.ne.s32.totalorder %s921_s30, %s625_s25  ;;  %p988_p0 = scmp.ne.s32.totalorder %s978_s22, 0 }
  0x5b   : > { %v236_v9 = vmax.f32 %v229_v3, %v234_v7  ;;  %s717_s12 = smov [#allocation7]  }
  0x5c   : > { %v320_v58 = vsub.s32 %v317_v53, %v319_v54  ;;  %p627_p7 = pnand %p626_p8, %p988_p0  ;;  %s629_s26 = sshll.u32 %s717_s12, 4  ;;  %s630_s26 = int_to_ptr.vmem [resolvable:$false] %s629_s26 }
  0x5d   : > { %v240_v11 = vmax.f32 %v236_v9, %v238_v8  ;;  %s631_s3 = scalar_lea.vmem %s630_s26, 64  ;;  %p632_p10 = scmp.lt.s32.totalorder %s921_s30, %s630_s26 }
  0x5e   : > { %p628_p4 = pneg %p627_p7  ;;  %p633_p12 = scmp.lt.s32.totalorder %s631_s3, %s625_s25 }
  0x5f   : > { %v244_v12 = vmax.f32 %v240_v11, %v242_v10 }
  0x60   : > { %v231_v61 = vld [vmem:[%s907_s19] sm:$0x3]  ;;  %p634_p1 = por %p633_p12, %p632_p10 }
  0x61   : > { %v245_v13 = vsub.f32 %v229_v3, %v244_v12  ;;  %v249_v14 = vrot.slane %v244_v12, 7  ;;  %v259_v15 = vrot.slane %v244_v12, 6  ;;  %v269_v16 = vrot.slane %v244_v12, 5 }
  0x62   : > { %p635_p2 = pnand %p634_p1, %p628_p4 }
  0x63   : > { %v246_v17 = vmul.f32 1.442695, %v245_v13  ;;  %v251_v18 = vsub.f32 %v229_v3, %v249_v14  ;;  %v261_v19 = vsub.f32 %v229_v3, %v259_v15  ;;  %v271_v20 = vsub.f32 %v229_v3, %v269_v16 }
  0x65   : > { %v252_v21 = vmul.f32 1.442695, %v251_v18  ;;  %v262_v22 = vmul.f32 1.442695, %v261_v19  ;;  %v272_v23 = vmul.f32 1.442695, %v271_v20  ;;  %555 = vpow2.f32 %v246_v17 }
  0x67   : > { %557 = vpow2.f32 %v252_v21 }
  0x68   : > { %559 = vpow2.f32 %v262_v22 }
  0x69   : > { %561 = vpow2.f32 %v272_v23 }
  0x6f   : > { %v556_v24 = vpop.eup %555 }
  0x71   : > { %v558_v25 = vpop.eup %557 }
  0x72   : > { %v560_v26 = vpop.eup %559  ;;  %v472_v27 = vrot.slane %v558_v25, 9 }
  0x73   : > { %v562_v28 = vpop.eup %561  ;;  %v473_v29 = vrot.slane %v560_v26, 10 }
  0x74   : > { %v258_v30 = vadd.f32 %v556_v24, %v472_v27  ;;  %v474_v31 = vrot.slane %v562_v28, 11 }
  0x76   : > { %v268_v32 = vadd.f32 %v473_v29, %v258_v30 }
  0x78   : > { %v278_v33 = vadd.f32 %v474_v31, %v268_v32 }
  0x7a   : > { %563 = vlog2.f32 %v278_v33 }
  0x84   : > { %v564_v34 = vpop.eup %563 }
  0x85   : > { %v280_v35 = vmul.f32 0.6931472, %v564_v34 }
  0x87   : > { %v281_v36 = vadd.f32 %v280_v35, %v244_v12 }
  0x89   : > { %v282_v37 = vsub.f32 %v281_v36, %v229_v3  ;;  %v284_v38 = vsub.f32 %v281_v36, %v234_v7  ;;  %v294_v39 = vsub.f32 %v281_v36, %v238_v8  ;;  %v304_v40 = vsub.f32 %v281_v36, %v242_v10 }
  0x8b   : > { %v286_v42 = vrot.slane %v284_v38, 7  ;;  %v296_v43 = vrot.slane %v294_v39, 6  ;;  %v306_v44 = vrot.slane %v304_v40, 5  ;;  %v283_v47 = vmul.f32 %v282_v37, %v230_v41 }
  0x8d   : > { %v288_v48 = vmul.f32 %v286_v42, %v230_v41  ;;  %v298_v49 = vmul.f32 %v296_v43, %v230_v41  ;;  %v308_v50 = vmul.f32 %v306_v44, %v230_v41 }
  0x8f   : > { %v475_v51 = vrot.slane %v288_v48, 9  ;;  %v476_v52 = vrot.slane %v298_v49, 10  ;;  %v477_v56 = vrot.slane %v308_v50, 11 }
  0x91   : > { %v293_v55 = vadd.f32 %v475_v51, %v283_v47 }
  0x93   : > { %v303_v57 = vadd.f32 %v476_v52, %v293_v55 }
  0x95   : > { %v313_v59 = vadd.f32 %v477_v56, %v303_v57 }
  0x97   : > { %v321_v60 = vrot.slane %v313_v59, %v320_v58 }
  0x99   : > { %v328_v62 = vrot.slane %v321_v60, %v320_v58 }
  0x9b   : > { %v330_v63 = vadd.f32 %v328_v62, %v231_v61 }
  0x9d   : > { %335 = vst.msk [vmem:[%s907_s19] sm:$0x3] %vm903_vm0, %v330_v63 }
  0x9e   : > { %638 = shalt.err (!%p635_p2)
}
  0x9f   : > { %s639_s8 = scalar_lea.hbm %s919_s28, 32  ;;  %s643_s4 = scalar_lea.hbm %s973_s2, 64 }
  0xa0   : > { %p640_p9 = scmp.ne.s32.totalorder %s919_s28, %s639_s8  ;;  %p644_p6 = scmp.lt.u32.totalorder %s919_s28, %s973_s2 }
  0xa1   : > { %p645_p13 = scmp.lt.u32.totalorder %s643_s4, %s639_s8  ;;  %p647_p8 = scmp.lt.u32.totalorder %s639_s8, %s919_s28 }
  0xa2   : > { %p641_p11 = pnand %p640_p9, %p988_p0 }
  0xa3   : > { %p646_p5 = por %p645_p13, %p644_p6 }
  0xa4   : > { %p642_p3 = pneg %p641_p11 }
  0xa5   : > { %p648_p7 = por %p647_p8, %p646_p5 }
  0xa7   : > { %p649_p4 = pnand %p648_p7, %p642_p3 }
  0xa9   : > { %652 = shalt.err (!%p649_p4)
}
  0xaa   : > { %490 = dma.vmem_to_hbm [thread:$0]  (%p988_p0), %s921_s30, 32, %s919_s28, %s337_s29  }
  0xab PF: > { %s363_s16 = sand.u32 1, %s691_s9   ;;  %p989_p10 = scmp.ne.s32.totalorder %s979_s24, 0 }
  0xac   : > { %p990_p12 = scmp.ge.s32.totalorder %s711_s14, 2  ;;  %s364_s7 = scalar_lea.sflag [#allocation4], %s363_s16 }
  0xae   : > { %p500_p1 = pnand %p990_p12, %p989_p10 }
  0xb0   : > { %686 = dma.done.wait (!%p500_p1), %s364_s7, 32  }
  0xb1   : > { %688 = vsyncadd (!%p500_p1), %s364_s7, 4294967264  ;;  %s21_s14 = sadd.s32 1, %s711_s14   ;;  %s991_s9 = smov %s695_s10 }
  0xb2   : > { %p18_p2 = scmp.ge.s32.totalorder %s21_s14, 4   ;;  %s992_s10 = smov %s699_s11 }
  0xb3   : > { %s993_s11 = smov %s789_s23  ;;  %s994_s12 = smov %s707_s13 }
  0xb4   : > { %s995_s13 = smov %s997_s17  ;;  %20 = sbr.rel (!%p18_p2) target bundleno = 8 (0x8), region = 90 }
  0xbb   :  { %369 = vsyncpa [#allocation3], 1 }
  0xbc   :  { %371 = vsyncpa [#allocation3 + $0x1], 1 }
  0xbd   :  { %372 = vsyncpa [#allocation6], 1 }
  0xbe   :  { %374 = vsyncpa [#allocation6 + $0x1], 1 }
  0xbf   :  { %375 = vsyncpa [#allocation4], 1 }
  0xc0   :  { %377 = vsyncpa [#allocation4 + $0x1], 1 }

</bundles_post_ra>
